<compile_context>
chip_gen: v7x
topology: tpu7x:2x2x1
jax: 0.10.0
libtpu: 0.0.40
codegen_flags: <defaults>
</compile_context>

<pallas_src>
import functools

import jax
import jax.numpy as jnp
from jax.experimental import pallas as pl
from jax.experimental.pallas import tpu as pltpu


# ----------------------------------------------------------------------------
# helpers
# ----------------------------------------------------------------------------
def _round_up(x, m):
    return ((x + m - 1) // m) * m


def _pad_cols(x, d_pad):
    r, c = x.shape
    if c == d_pad:
        return x
    return jnp.pad(x, ((0, 0), (0, d_pad - c)))


def _vmem_capacity_bytes():
    """Physical VMEM of the current chip; conservative fallback if unknown."""
    try:
        info = pltpu.get_tpu_info()
        cap = int(getattr(info, "vmem_capacity_bytes", 0))
        if cap > 0:
            return cap
    except Exception:
        pass
    return 64 << 20  # v7x-sized fallback: safe on every generation


# Approximate HBM-roofline efficiency of the mem-bound sweep vs. square
# adjacency-tile edge (from the tile-size sweep measurements).
_TILE_EFF = {128: 0.30, 256: 0.60, 384: 0.72, 512: 0.82,
             640: 0.84, 768: 0.85, 896: 0.86}


def _tile_eff(t):
    return _TILE_EFF.get(t, 0.88 if t >= 1024 else 0.80)


def _largest_tile_divisor(n_pad, max_tile):
    best = 128
    t = 128
    cap = min(max_tile, n_pad)
    while t <= cap:
        if n_pad % t == 0:
            best = t
        t += 128
    return best


def _choose_adj_tiling(n, max_tile):
    """Pick (n_pad, tm, tk).

    Minimal 128-granular padding unless a little extra padding buys a much
    better divisor tile (scored by padded-bytes / tile efficiency)."""
    base = _round_up(n, 128)
    best = None
    for extra in range(8):
        n_pad = base + extra * 128
        t = _largest_tile_divisor(n_pad, max_tile)
        cost = (n_pad * n_pad) / _tile_eff(t)  # ~ HBM time of the adj stream
        if best is None or cost < best[0]:
            best = (cost, n_pad, t)
    _, n_pad, t = best
    tm = tk = t
    # Megacore (v7x): keep the "parallel" row axis splittable across 2 cores
    # when the problem is big enough to matter.
    if n_pad // tm < 2 and n_pad >= 1024:
        tm = n_pad // 2  # still a multiple of 64 (sublane-legal) and divides n_pad
    return n_pad, tm, tk


def _plan_propagation(n, d_pad):
    """Per-generation tiling / VMEM plan for the LightGCN sweep."""
    cap = _vmem_capacity_bytes()
    max_tile = 2048 if cap >= (100 << 20) else 1024  # v5e/v6e : v7x
    n_pad, tm, tk = _choose_adj_tiling(n, max_tile)
    n_i, n_k = n_pad // tm, n_pad // tk
    budget = int(cap * 0.80)

    n_adj_bufs = 3 if n_k > 2 else 2
    adj_bytes = n_adj_bufs * tm * tk * 2          # bf16 adjacency tiles
    out_bytes = 2 * tm * d_pad * 4                # f32 output tiles (x2 bufs)
    emb_res_bytes = 2 * n_pad * d_pad * 2         # resident bf16 emb (x2, worst case)
    emb_str_bytes = 2 * tk * d_pad * 2            # streamed bf16 emb tiles

    resident = adj_bytes + out_bytes + emb_res_bytes <= budget
    need = adj_bytes + out_bytes + (emb_res_bytes if resident else emb_str_bytes)
    assert need <= budget, "propagation tile footprint exceeds the VMEM budget"
    vmem_limit = int(min(max(need + (2 << 20), 4 << 20), budget))

    return dict(n_pad=n_pad, tm=tm, tk=tk, n_i=n_i, n_k=n_k,
                resident=resident, n_adj_bufs=n_adj_bufs,
                vmem_limit=vmem_limit)


# ----------------------------------------------------------------------------
# Kernel 1: one LightGCN propagation layer  (out = adj @ emb)
#   grid = (row tiles, contraction tiles); the f32 output block is revisited
#   across k and used directly as the accumulator (no scratch, no final copy).
#   adj and emb are both bf16; accumulation is f32 via preferred_element_type.
# ----------------------------------------------------------------------------
def _lightgcn_stream_kernel(adj_ref, emb_ref, out_ref):
    @pl.when(pl.program_id(1) == 0)
    def _():
        out_ref[...] = jnp.zeros_like(out_ref)

    out_ref[...] += jnp.dot(adj_ref[...], emb_ref[...],
                            preferred_element_type=jnp.float32)


def _lightgcn_resident_kernel(adj_ref, emb_ref, out_ref, *, tk):
    k = pl.program_id(1)

    @pl.when(k == 0)
    def _():
        out_ref[...] = jnp.zeros_like(out_ref)

    start = pl.multiple_of(k * tk, tk)
    out_ref[...] += jnp.dot(adj_ref[...], emb_ref[pl.ds(start, tk), :],
                            preferred_element_type=jnp.float32)


def lightgcn_layer(adj_bf16, emb_bf16, plan):
    n_pad, tm, tk = plan["n_pad"], plan["tm"], plan["tk"]
    d_pad = emb_bf16.shape[1]

    if plan["n_adj_bufs"] > 2:
        adj_spec = pl.BlockSpec((tm, tk), lambda i, k: (i, k),
                                pipeline_mode=pl.Buffered(plan["n_adj_bufs"]))
    else:
        adj_spec = pl.BlockSpec((tm, tk), lambda i, k: (i, k))

    if plan["resident"]:
        # Whole bf16 embedding resident in VMEM (constant index_map -> DMA'd
        # once per layer), sliced in-kernel along the contraction axis.
        kernel = functools.partial(_lightgcn_resident_kernel, tk=tk)
        emb_spec = pl.BlockSpec((n_pad, d_pad), lambda i, k: (0, 0))
    else:
        kernel = _lightgcn_stream_kernel
        emb_spec = pl.BlockSpec((tk, d_pad), lambda i, k: (k, 0))

    return pl.pallas_call(
        kernel,
        out_shape=jax.ShapeDtypeStruct((n_pad, d_pad), jnp.float32),
        grid=(plan["n_i"], plan["n_k"]),
        in_specs=[adj_spec, emb_spec],
        out_specs=pl.BlockSpec((tm, d_pad), lambda i, k: (i, 0)),
        compiler_params=pltpu.CompilerParams(
            dimension_semantics=("parallel", "arbitrary"),
            vmem_limit_bytes=plan["vmem_limit"],
        ),
    )(adj_bf16, emb_bf16)


# ----------------------------------------------------------------------------
# Kernel 2: fused predictor Linear + momentum-EMA target
#   pred   = x @ W^T + b           (bf16 x bf16 MXU matmul, f32 accumulate)
#   target = his * momentum + x * (1 - momentum)      (f32)
# Runs once on the concatenated (users ++ items) batch, lane-dense D_pad.
# ----------------------------------------------------------------------------
def _predict_target_kernel(x_ref, his_ref, wT_ref, b_ref,
                           pred_ref, tgt_ref, *, momentum):
    x = x_ref[...]  # f32
    pred_ref[...] = (
        jnp.dot(x.astype(jnp.bfloat16), wT_ref[...],
                preferred_element_type=jnp.float32) + b_ref[...]
    )
    tgt_ref[...] = his_ref[...] * momentum + x * (1.0 - momentum)


def predict_and_target(x, his, wT_bf16, b, momentum, tb):
    bp, d_pad = x.shape
    grid = (bp // tb,)
    kernel = functools.partial(_predict_target_kernel, momentum=float(momentum))

    need = (4 * (2 * tb * d_pad * 4)      # x, his, pred, tgt tiles (x2 bufs each)
            + 2 * d_pad * d_pad * 2       # resident bf16 W^T
            + 2 * d_pad * 4)              # bias
    vmem_limit = int(min(max(2 * need, 4 << 20), 48 << 20))

    return pl.pallas_call(
        kernel,
        out_shape=(
            jax.ShapeDtypeStruct((bp, d_pad), jnp.float32),
            jax.ShapeDtypeStruct((bp, d_pad), jnp.float32),
        ),
        grid=grid,
        in_specs=[
            pl.BlockSpec((tb, d_pad), lambda i: (i, 0)),
            pl.BlockSpec((tb, d_pad), lambda i: (i, 0)),
            pl.BlockSpec((d_pad, d_pad), lambda i: (0, 0)),
            pl.BlockSpec((1, d_pad), lambda i: (0, 0)),
        ],
        out_specs=(
            pl.BlockSpec((tb, d_pad), lambda i: (i, 0)),
            pl.BlockSpec((tb, d_pad), lambda i: (i, 0)),
        ),
        compiler_params=pltpu.CompilerParams(
            dimension_semantics=("parallel",),
            vmem_limit_bytes=vmem_limit,
        ),
    )(x, his, wT_bf16, b)


# ----------------------------------------------------------------------------
# SelfCFEncoder (functional JAX wrapper around the Pallas kernels)
# ----------------------------------------------------------------------------
class SelfCFEncoderPallas:
    def __init__(self, norm_adj, user_num, item_num, emb_size, momentum,
                 n_layers, key):
        self.user_num = user_num
        self.item_num = item_num
        self.emb_size = emb_size
        self.momentum = float(momentum)
        self.n_layers = n_layers

        n = user_num + item_num
        self.n = n
        self.d_pad = _round_up(emb_size, 128)  # lane-dense embedding width
        self.plan = _plan_propagation(n, self.d_pad)
        self.n_pad = self.plan["n_pad"]

        # Adjacency: zero-pad to the planned size, cast once to bf16 (halves
        # HBM traffic of the bandwidth-bound propagation; accumulation is f32).
        # TODO(synk): on v7x the MXU takes fp8 natively; storing the adjacency
        # as e4m3 would halve the dominant HBM stream again (validate numerics
        # against an f32 reference first).
        adj = jnp.zeros((self.n_pad, self.n_pad), jnp.float32)
        adj = adj.at[:n, :n].set(norm_adj.astype(jnp.float32))
        self.norm_adj = adj.astype(jnp.bfloat16)

        k_ue, k_ie, k_w, k_b, k_uh, k_ih = jax.random.split(key, 6)

        # LightGCN embedding tables, zero-padded beyond emb_size so padded
        # lanes stay exactly zero through propagation.
        scale = 1.0 / jnp.sqrt(jnp.float32(emb_size))
        ue = jax.random.normal(k_ue, (user_num, emb_size), jnp.float32) * scale
        ie = jax.random.normal(k_ie, (item_num, emb_size), jnp.float32) * scale
        self.user_emb = _pad_cols(ue, self.d_pad)
        self.item_emb = _pad_cols(ie, self.d_pad)

        # predictor = nn.Linear(emb_size, emb_size): y = x @ W.T + b.
        # W^T is precomputed ONCE, zero-padded to (d_pad, d_pad) and stored bf16.
        bound = 1.0 / jnp.sqrt(jnp.float32(emb_size))
        w = jax.random.uniform(k_w, (emb_size, emb_size), jnp.float32,
                               -bound, bound)
        b = jax.random.uniform(k_b, (emb_size,), jnp.float32, -bound, bound)
        wT = (jnp.zeros((self.d_pad, self.d_pad), jnp.float32)
              .at[:emb_size, :emb_size].set(w.T))
        self.pred_wT = wT.astype(jnp.bfloat16)
        self.pred_b = (jnp.zeros((1, self.d_pad), jnp.float32)
                       .at[0, :emb_size].set(b))

        # target history buffers (torch.randn equivalent); padded lanes unused.
        uh = jax.random.normal(k_uh, (user_num, emb_size), jnp.float32)
        ih = jax.random.normal(k_ih, (item_num, emb_size), jnp.float32)
        self.u_target_his = _pad_cols(uh, self.d_pad)
        self.i_target_his = _pad_cols(ih, self.d_pad)

    # ------------------------------------------------------------------ #
    def _propagate(self):
        """LightGCN: mean over layers of adj^l @ emb0 (l = 0..n_layers)."""
        emb0 = jnp.concatenate([self.user_emb, self.item_emb], axis=0)
        if self.n_pad != self.n:
            emb0 = jnp.pad(emb0, ((0, self.n_pad - self.n), (0, 0)))
        cur = emb0
        acc = emb0
        for _ in range(self.n_layers):  # true layer dependence -> one call/layer
            # bf16 cast done once per layer in glue, not per grid step.
            cur = lightgcn_layer(self.norm_adj, cur.astype(jnp.bfloat16),
                                 self.plan)
            acc = acc + cur
        all_emb = acc * (1.0 / float(self.n_layers + 1))
        return all_emb[: self.n]

    # ------------------------------------------------------------------ #
    def forward(self, users, items):
        D = self.emb_size

        # --- online encoder (LightGCN) : tiled Pallas kernels ---------------
        all_emb = self._propagate()
        u_online = all_emb[: self.user_num]
        i_online = all_emb[self.user_num:]

        # --- row gathers (glue) ----------------------------------------------
        # TODO(synk): fuse the gathers / concat / pad and the history scatter
        # into the predictor kernel via PrefetchScalarGridSpec + pl.Element row
        # blocks + input_output_aliases for large production batches.
        u_on_sel = u_online[users]
        i_on_sel = i_online[items]
        u_his_sel = self.u_target_his[users]
        i_his_sel = self.i_target_his[items]

        # --- fused predictor + EMA target (users ++ items in ONE call) -------
        bu = u_on_sel.shape[0]
        bi = i_on_sel.shape[0]
        b_tot = bu + bi
        x = jnp.concatenate([u_on_sel, i_on_sel], axis=0)
        his = jnp.concatenate([u_his_sel, i_his_sel], axis=0)

        if b_tot <= 256:
            bp = _round_up(b_tot, 8)
            tb = bp
        else:
            bp = _round_up(b_tot, 256)
            tb = 256
        if bp != b_tot:
            x = jnp.pad(x, ((0, bp - b_tot), (0, 0)))
            his = jnp.pad(his, ((0, bp - b_tot), (0, 0)))

        pred, tgt = predict_and_target(x, his, self.pred_wT, self.pred_b,
                                       self.momentum, tb)

        u_pred = pred[:bu, :D]
        i_pred = pred[bu:b_tot, :D]
        u_target = tgt[:bu, :D]
        i_target = tgt[bu:b_tot, :D]

        # --- in-place history update -> functional scatter (glue) -------------
        self.u_target_his = self.u_target_his.at[users].set(u_on_sel)
        self.i_target_his = self.i_target_his.at[items].set(i_on_sel)

        return u_pred, u_target, i_pred, i_target


# ----------------------------------------------------------------------------
# Deterministic small example
# ----------------------------------------------------------------------------
def build_norm_adj(key, user_num, item_num):
    """Symmetric-normalized bipartite adjacency D^-1/2 A D^-1/2 (dense)."""
    N = user_num + item_num
    r = jax.random.uniform(key, (user_num, item_num))
    inter = (r < 0.3).astype(jnp.float32)
    adj = jnp.zeros((N, N), jnp.float32)
    adj = adj.at[:user_num, user_num:].set(inter)
    adj = adj.at[user_num:, :user_num].set(inter.T)
    deg = jnp.sum(adj, axis=1)
    d_inv_sqrt = jnp.where(deg > 0, 1.0 / jnp.sqrt(deg), 0.0)
    return adj * d_inv_sqrt[:, None] * d_inv_sqrt[None, :]


if __name__ == "__main__":
    user_num, item_num = 12, 20
    emb_size = 32
    n_layers = 2
    momentum = 0.05

    key = jax.random.PRNGKey(0)
    k_adj, k_model, k_u, k_i = jax.random.split(key, 4)

    norm_adj = build_norm_adj(k_adj, user_num, item_num)
    model = SelfCFEncoderPallas(norm_adj, user_num, item_num, emb_size,
                                momentum, n_layers, k_model)

    users = jax.random.randint(k_u, (6,), 0, user_num)
    items = jax.random.randint(k_i, (6,), 0, item_num)

    u_pred, u_target, i_pred, i_target = model.forward(users, items)
    jax.block_until_ready((u_pred, u_target, i_pred, i_target,
                           model.u_target_his, model.i_target_his))

    assert u_pred.shape == (6, emb_size) and u_target.shape == (6, emb_size)
    assert i_pred.shape == (6, emb_size) and i_target.shape == (6, emb_size)
    assert bool(jnp.all(jnp.isfinite(u_pred))) and bool(jnp.all(jnp.isfinite(i_pred)))
    assert bool(jnp.all(jnp.isfinite(u_target))) and bool(jnp.all(jnp.isfinite(i_target)))
    print("KERNEL_OK")
</pallas_src>

<mosaic_0001>
module attributes {stable_mosaic.version = 11 : i64} {
  func.func @_lightgcn_resident_kernel(%arg0: i32, %arg1: i32, %arg2: memref<128x128xbf16, #tpu.memory_space<vmem>>, %arg3: memref<128x128xbf16, #tpu.memory_space<vmem>>, %arg4: memref<128x128xf32, #tpu.memory_space<vmem>>) attributes {dimension_semantics = [#tpu.dimension_semantics<parallel>, #tpu.dimension_semantics<arbitrary>], iteration_bounds = array<i64: 1, 1>, scalar_prefetch = 0 : i64, scratch_operands = 0 : i64, tpu.core_type = #tpu.core_type<tc>, window_params = [{transform_indices = @transform_0, window_bounds = array<i64: 128, 128>}, {pipeline_mode = #tpu.pipeline_mode<synchronous>, transform_indices = @transform_1, window_bounds = array<i64: 128, 128>}, {transform_indices = @transform_2, window_bounds = array<i64: 128, 128>}]} {
    %c0_i32 = arith.constant 0 : i32
    %0 = arith.cmpi eq, %arg1, %c0_i32 : i32
    %1 = arith.extui %0 : i1 to i32
    %c0_i32_0 = arith.constant 0 : i32
    %2 = arith.cmpi ne, %1, %c0_i32_0 : i32
    scf.if %2 {
      %cst_7 = arith.constant 0.000000e+00 : f32
      %12 = vector.broadcast %cst_7 : f32 to vector<128x128xf32>
      %c0_8 = arith.constant 0 : index
      %c0_9 = arith.constant 0 : index
      %13 = vector.load %arg4[%c0_8, %c0_9] : memref<128x128xf32, #tpu.memory_space<vmem>>, vector<128x128xf32>
      tpu.vector_store %arg4[%c0_8, %c0_9], %12 {strides = array<i32>} : memref<128x128xf32, #tpu.memory_space<vmem>>, vector<128x128xf32>,
    } else {
    }
    %c128_i32 = arith.constant 128 : i32
    %3 = arith.muli %arg1, %c128_i32 : i32
    %4 = tpu.assume_multiple %3, 128 : i32
    %c0 = arith.constant 0 : index
    %c0_1 = arith.constant 0 : index
    %5 = vector.load %arg4[%c0, %c0_1] : memref<128x128xf32, #tpu.memory_space<vmem>>, vector<128x128xf32>
    %c0_2 = arith.constant 0 : index
    %c0_3 = arith.constant 0 : index
    %6 = vector.load %arg2[%c0_2, %c0_3] : memref<128x128xbf16, #tpu.memory_space<vmem>>, vector<128x128xbf16>
    %7 = arith.index_cast %4 : i32 to index
    %c0_4 = arith.constant 0 : index
    %8 = vector.load %arg3[%7, %c0_4] : memref<128x128xbf16, #tpu.memory_space<vmem>>, vector<128x128xbf16>
    %cst = arith.constant dense<0.000000e+00> : vector<128x128xf32>
    %9 = tpu.matmul %6, %8, %cst {dimension_numbers = #tpu.dot_dimension_numbers<[1], [0], [0], [1], [0, 0, 1, 1], [], []>} : vector<128x128xbf16>, vector<128x128xbf16>, vector<128x128xf32> -> vector<128x128xf32>
    %10 = arith.addf %5, %9 : vector<128x128xf32>
    %c0_5 = arith.constant 0 : index
    %c0_6 = arith.constant 0 : index
    %11 = vector.load %arg4[%c0_5, %c0_6] : memref<128x128xf32, #tpu.memory_space<vmem>>, vector<128x128xf32>
    tpu.vector_store %arg4[%c0_5, %c0_6], %10 {strides = array<i32>} : memref<128x128xf32, #tpu.memory_space<vmem>>, vector<128x128xf32>,
    return
  }
  func.func @transform_0(%arg0: i32, %arg1: i32) -> (i32, i32) {
    %c0_i32 = arith.constant 0 : i32
    return %arg0, %arg1 : i32, i32
  }
  func.func @transform_1(%arg0: i32, %arg1: i32) -> (i32, i32) {
    %c0_i32 = arith.constant 0 : i32
    %c0_i32_0 = arith.constant 0 : i32
    %c0_i32_1 = arith.constant 0 : i32
    return %c0_i32, %c0_i32_0 : i32, i32
  }
  func.func @transform_2(%arg0: i32, %arg1: i32) -> (i32, i32) {
    %c0_i32 = arith.constant 0 : i32
    %c0_i32_0 = arith.constant 0 : i32
    return %arg0, %c0_i32 : i32, i32
  }
}

</mosaic_0001>

<bundles_post_ra>
// kernel: tpu_custom_call.1
= control target key start
LH: loop header
LB: loop body
LE: loop exit
PB: predicated region body
PF: predicated region fallthrough
CT: control target
= control target key end

     0   :  { %7 = vsyncpa [#allocation3], 0  ;;  %s593_s0 = inlined_call_operand.hbm [shape: bf16[128,128], index: 0, kind: input, shape index: {}]   ;;  %s594_s1 = inlined_call_operand.hbm [shape: bf16[128,128], index: 1, kind: input, shape index: {}]   ;;  %s595_s2 = inlined_call_operand.hbm [shape: f32[128,128], index: 2, kind: output, shape index: {}]  }
   0x1   :  { %8 = vsyncpa [#allocation6], 0 }
   0x2   :  { %9 = vsyncpa [#allocation4], 0  ;;  %s535_s9 = smov [#allocation2]   ;;  %s463_s13 = scalar_lea.hbm %s593_s0, 1024 }
   0x3   :  { %s15_s10 = sshll.u32 %s535_s9, 4  ;;  %p464_p0 = scmp.ne.s32.totalorder %s593_s0, %s463_s13  ;;  %s16_s10 = int_to_ptr.vmem [resolvable:$true] %s15_s10 }
   0x4   :  { %p467_p1 = scmp.lt.u32.totalorder %s463_s13, %s593_s0 }
   0x6   :  { %p469_p2 = pnand %p467_p1, %p464_p0 }
   0x8   :  { %472 = shalt.err (!%p469_p2)
}
   0x9   :  { %s473_s18 = scalar_lea.vmem %s16_s10, 1024  ;;  %p478_p4 = scmp.lt.s32.totalorder %s16_s10, %s16_s10 }
   0xa   :  { %p474_p3 = scmp.ne.s32.totalorder %s16_s10, %s473_s18  ;;  %p479_p5 = scmp.lt.s32.totalorder %s473_s18, %s473_s18 }
   0xc   :  { %p480_p6 = por %p479_p5, %p478_p4 }
   0xe   :  { %p481_p7 = pnand %p480_p6, %p474_p3 }
  0x10   :  { %484 = shalt.err (!%p481_p7)
}
  0x11   :  { %s536_s19 = smov 64   ;;  %s537_s20 = smov 4  }
  0x12   :  { %21 = dma.hbm_to_vmem [thread:$0]  %s593_s0, 1024, %s16_s10, [#allocation3], %s536_s19, %s536_s19, %s537_s20  }
  0x13   :  { %s538_s23 = smov [#allocation5]   ;;  %s485_s27 = scalar_lea.hbm %s594_s1, 1024 }
  0x14   :  { %s27_s24 = sshll.u32 %s538_s23, 4  ;;  %p486_p8 = scmp.ne.s32.totalorder %s594_s1, %s485_s27  ;;  %s28_s24 = int_to_ptr.vmem [resolvable:$true] %s27_s24 }
  0x15   :  { %p489_p9 = scmp.lt.u32.totalorder %s485_s27, %s594_s1 }
  0x17   :  { %p491_p10 = pnand %p489_p9, %p486_p8 }
  0x19   :  { %494 = shalt.err (!%p491_p10)
}
  0x1a   :  { %s495_s4 = scalar_lea.vmem %s28_s24, 1024  ;;  %p500_p12 = scmp.lt.s32.totalorder %s28_s24, %s28_s24 }
  0x1b   :  { %p496_p11 = scmp.ne.s32.totalorder %s28_s24, %s495_s4  ;;  %p501_p13 = scmp.lt.s32.totalorder %s495_s4, %s495_s4 }
  0x1d   :  { %p502_p0 = por %p501_p13, %p500_p12 }
  0x1f   :  { %p503_p1 = pnand %p502_p0, %p496_p11 }
  0x21   :  { %506 = shalt.err (!%p503_p1)
}
  0x22   :  { %33 = dma.hbm_to_vmem [thread:$0]  %s594_s1, 1024, %s28_s24, [#allocation6], %s536_s19, %s536_s19, %s537_s20  }
  0x23   :  { %529 = dma.done.wait [#allocation3], 1024  }
  0x24   :  { %530 = vsyncadd [#allocation3], 4294966272 }
  0x25   :  { %531 = dma.done.wait [#allocation6], 1024  }
  0x26   :  { %532 = vsyncadd [#allocation6], 4294966272  ;;  %v447_v0 = vld [vmem:[#allocation5] sm:$0xff]   ;;  %v448_v1 = vld [vmem:[#allocation5 + $0x8] sm:$0xff]   ;;  %s539_s1 = smov [#allocation7]  }
  0x27   :  { %391 = vmatprep.subr.bf16.mxu0 %v447_v0  ;;  %423 = vmatprep.subr.bf16.mxu1 %v447_v0  ;;  %v449_v2 = vld [vmem:[#allocation5 + $0x10] sm:$0xff]   ;;  %v450_v3 = vld [vmem:[#allocation5 + $0x18] sm:$0xff]   ;;  %v455_v4 = vld [vmem:[#allocation2] sm:$0xff]   ;;  %s344_s6 = sshll.u32 %s539_s1, 4  ;;  %s345_s6 = int_to_ptr.vmem [resolvable:$true] %s344_s6 }
  0x28   :  { %392 = vmatpush3.bf16.msra.mxu0 %v447_v0  ;;  %431 = vmatpush3.bf16.msra.mxu1 %v447_v0  ;;  %v456_v5 = vld [vmem:[#allocation2 + $0x20] sm:$0xff]   ;;  %v452_v7 = vld [vmem:[#allocation5 + $0x28] sm:$0xff]   ;;  %v453_v8 = vld [vmem:[#allocation5 + $0x30] sm:$0xff]   ;;  %s507_s7 = scalar_lea.vmem %s345_s6, 2048  ;;  %p512_p3 = scmp.lt.s32.totalorder %s345_s6, %s345_s6 }
  0x29   :  { %393 = vmatprep.subr.bf16.mxu0 %v448_v1  ;;  %424 = vmatprep.subr.bf16.mxu1 %v448_v1  ;;  %v451_v6 = vld [vmem:[#allocation5 + $0x20] sm:$0xff]   ;;  %v454_v9 = vld [vmem:[#allocation5 + $0x38] sm:$0xff]   ;;  %v457_v10 = vld [vmem:[#allocation2 + $0x8] sm:$0xff]   ;;  %p508_p2 = scmp.ne.s32.totalorder %s345_s6, %s507_s7  ;;  %p513_p4 = scmp.lt.s32.totalorder %s507_s7, %s507_s7 }
  0x2a   :  { %407 = vmatprep.mubr.bf16.mxu0 %v455_v4  ;;  %415 = vmatprep.mubr.bf16.mxu1 %v456_v5  ;;  %v458_v11 = vld [vmem:[#allocation2 + $0x28] sm:$0xff]   ;;  %v459_v12 = vld [vmem:[#allocation2 + $0x10] sm:$0xff]   ;;  %v461_v14 = vld [vmem:[#allocation2 + $0x18] sm:$0xff]  }
  0x2b   :  { %v460_v13 = vld [vmem:[#allocation2 + $0x30] sm:$0xff]   ;;  %v462_v15 = vld [vmem:[#allocation2 + $0x38] sm:$0xff]   ;;  %p514_p5 = por %p513_p4, %p512_p3 }
  0x2c   :  { %394 = vmatpush3.bf16.msra.mxu0 %v448_v1  ;;  %432 = vmatpush3.bf16.msra.mxu1 %v448_v1 }
  0x2d   :  { %395 = vmatprep.subr.bf16.mxu0 %v449_v2  ;;  %425 = vmatprep.subr.bf16.mxu1 %v449_v2  ;;  %p515_p6 = pnand %p514_p5, %p508_p2 }
  0x30   :  { %396 = vmatpush3.bf16.msra.mxu0 %v449_v2  ;;  %433 = vmatpush3.bf16.msra.mxu1 %v449_v2 }
  0x31   :  { %397 = vmatprep.subr.bf16.mxu0 %v450_v3  ;;  %426 = vmatprep.subr.bf16.mxu1 %v450_v3 }
  0x34   :  { %398 = vmatpush3.bf16.msra.mxu0 %v450_v3  ;;  %434 = vmatpush3.bf16.msra.mxu1 %v450_v3 }
  0x35   :  { %399 = vmatprep.subr.bf16.mxu0 %v451_v6  ;;  %427 = vmatprep.subr.bf16.mxu1 %v451_v6 }
  0x38   :  { %400 = vmatpush3.bf16.msra.mxu0 %v451_v6  ;;  %435 = vmatpush3.bf16.msra.mxu1 %v451_v6 }
  0x39   :  { %401 = vmatprep.subr.bf16.mxu0 %v452_v7  ;;  %428 = vmatprep.subr.bf16.mxu1 %v452_v7 }
  0x3c   :  { %402 = vmatpush3.bf16.msra.mxu0 %v452_v7  ;;  %436 = vmatpush3.bf16.msra.mxu1 %v452_v7 }
  0x3d   :  { %403 = vmatprep.subr.bf16.mxu0 %v453_v8  ;;  %429 = vmatprep.subr.bf16.mxu1 %v453_v8 }
  0x40   :  { %404 = vmatpush3.bf16.msra.mxu0 %v453_v8  ;;  %437 = vmatpush3.bf16.msra.mxu1 %v453_v8 }
  0x41   :  { %405 = vmatprep.subr.bf16.mxu0 %v454_v9  ;;  %430 = vmatprep.subr.bf16.mxu1 %v454_v9 }
  0x44   :  { %406 = vmatpush3.bf16.msra.mxu0 %v454_v9  ;;  %438 = vmatpush3.bf16.msra.mxu1 %v454_v9 }
  0x47   :  { %408 = vmatmul.mubr.bf16.vlgmr.msra.gmra.mrb[0].mxu0 %v457_v10  ;;  %416 = vmatmul.mubr.bf16.vlgmr.msra.gmra.mrb[0].mxu1 %v458_v11 }
  0x48   :  { %411 = vmatprep.mubr.bf16.mxu0 %v459_v12  ;;  %419 = vmatprep.mubr.bf16.mxu1 %v460_v13 }
  0x4f   :  { %412 = vmatmul.mubr.bf16.gmra.mrb[4].mxu0 %v461_v14  ;;  %420 = vmatmul.mubr.bf16.gmra.mrb[4].mxu1 %v462_v15 }
 0x11a   :  { %v409_v16 = vpop.f32.mrb[0].mxu0  ;;  %v417_v17 = vpop.f32.mrb[0].mxu1 }
 0x11b   :  { %v244_v18 = vpop.f32.mrb[1].mxu0  ;;  %v276_v19 = vpop.f32.mrb[1].mxu1  ;;  %325 = vst [vmem:[#allocation7 + $0x10] sm:$0xff] %v409_v16  ;;  %333 = vst [vmem:[#allocation7 + $0x50] sm:$0xff] %v417_v17 }
 0x11c   :  { %v410_v20 = vpop.f32.mrb[2].mxu0  ;;  %v418_v21 = vpop.f32.mrb[2].mxu1  ;;  %323 = vst [vmem:[#allocation7] sm:$0xff] %v244_v18  ;;  %331 = vst [vmem:[#allocation7 + $0x40] sm:$0xff] %v276_v19 }
 0x11d   :  { %v247_v22 = vpop.f32.mrb[3].mxu0  ;;  %v279_v23 = vpop.f32.mrb[3].mxu1  ;;  %326 = vst [vmem:[#allocation7 + $0x18] sm:$0xff] %v410_v20  ;;  %334 = vst [vmem:[#allocation7 + $0x58] sm:$0xff] %v418_v21 }
 0x11e   :  { %324 = vst [vmem:[#allocation7 + $0x8] sm:$0xff] %v247_v22  ;;  %332 = vst [vmem:[#allocation7 + $0x48] sm:$0xff] %v279_v23 }
 0x122   :  { %v413_v24 = vpop.f32.mrb[4].mxu0  ;;  %v421_v25 = vpop.f32.mrb[4].mxu1 }
 0x123   :  { %v260_v26 = vpop.f32.mrb[5].mxu0  ;;  %v292_v27 = vpop.f32.mrb[5].mxu1  ;;  %329 = vst [vmem:[#allocation7 + $0x30] sm:$0xff] %v413_v24  ;;  %337 = vst [vmem:[#allocation7 + $0x70] sm:$0xff] %v421_v25 }
 0x124   :  { %v414_v28 = vpop.f32.mrb[6].mxu0  ;;  %v422_v29 = vpop.f32.mrb[6].mxu1  ;;  %327 = vst [vmem:[#allocation7 + $0x20] sm:$0xff] %v260_v26  ;;  %335 = vst [vmem:[#allocation7 + $0x60] sm:$0xff] %v292_v27 }
 0x125   :  { %v263_v30 = vpop.f32.mrb[7].mxu0  ;;  %v295_v31 = vpop.f32.mrb[7].mxu1  ;;  %330 = vst [vmem:[#allocation7 + $0x38] sm:$0xff] %v414_v28  ;;  %338 = vst [vmem:[#allocation7 + $0x78] sm:$0xff] %v422_v29 }
 0x126   :  { %328 = vst [vmem:[#allocation7 + $0x28] sm:$0xff] %v263_v30  ;;  %336 = vst [vmem:[#allocation7 + $0x68] sm:$0xff] %v295_v31 }
 0x127   :  { %518 = shalt.err (!%p515_p6)
}
 0x128   :  { %s519_s10 = scalar_lea.hbm %s595_s2, 2048 }
 0x129   :  { %p520_p7 = scmp.ne.s32.totalorder %s595_s2, %s519_s10  ;;  %p523_p8 = scmp.lt.u32.totalorder %s519_s10, %s595_s2 }
 0x12b   :  { %p525_p9 = pnand %p523_p8, %p520_p7 }
 0x12d   :  { %528 = shalt.err (!%p525_p9)
}
 0x12e   :  { %s540_s15 = smov 128   ;;  %s541_s16 = smov 8  }
 0x12f   :  { %350 = dma.vmem_to_hbm [thread:$0]  %s345_s6, 2048, %s595_s2, [#allocation4], %s540_s15, %s540_s15, %s541_s16  }
 0x130   :  { %533 = dma.done.wait [#allocation4], 2048  }
 0x131   :  { %534 = vsyncadd [#allocation4], 4294965248 }
 0x132   :  { %354 = vsyncpa [#allocation3], 1 }
 0x133   :  { %355 = vsyncpa [#allocation6], 1 }
 0x134   :  { %356 = vsyncpa [#allocation4], 1 }

</bundles_post_ra>
